<compile_context>
chip_gen: v5e
topology: v5e:2x2
jax: 0.10.0
libtpu: 0.0.40
codegen_flags: <defaults>
</compile_context>

<pallas_src>
import functools

import jax
import jax.numpy as jnp
from jax.experimental import pallas as pl
from jax.experimental.pallas import tpu as pltpu


def _round_up(x, m):
    return (x + m - 1) // m * m


def _round_down(x, m):
    return x // m * m


# ---------------------------------------------------------------------------
# Excitation MLP on pooled means (shared by both paths).
# ---------------------------------------------------------------------------
def _excite(s, w1t_ref, b1_ref, w2_ref, b2_ref):
    """s: (bt, C, 1) f32 pooled means (C on sublanes) -> (bt, C, 1) f32 gates.

    Both dense layers are exact-f32 broadcast-multiply + reductions:
      layer 1 contracts C on the sublane axis, layer 2 contracts Cr on the
      lane axis, so the intermediate never has to change layout and the
      result is already a lane-broadcastable column.
    """
    w1t = w1t_ref[...]                   # (C, Cr)  == W1^T
    w2 = w2_ref[...]                     # (C, Cr)  == W2 (torch (out,in) layout)
    b1 = b1_ref[...]                     # (1, Cr)
    b2 = b2_ref[...]                     # (C, 1)
    # h[b, r] = sum_c s[b, c] * W1[r, c] + b1[r]      (sublane reduce)
    h = jnp.sum(s * w1t[None, :, :], axis=1, keepdims=True) + b1[None, :, :]
    h = h * jax.nn.sigmoid(h)            # Swish
    # z[b, c] = sum_r W2[c, r] * h[b, r] + b2[c]      (lane reduce)
    z = jnp.sum(w2[None, :, :] * h, axis=2, keepdims=True) + b2[None, :, :]
    return jax.nn.sigmoid(z)             # (bt, C, 1)


# ---------------------------------------------------------------------------
# Fused path: pool + excitation + rescale in a single streamed pass over x.
# ---------------------------------------------------------------------------
def _se_fused_kernel(x_ref, w1t_ref, b1_ref, w2_ref, b2_ref, o_ref, *, inv_hw):
    x_raw = x_ref[...]                                           # (bt, C, HW)
    s = jnp.sum(x_raw.astype(jnp.float32), axis=-1, keepdims=True) * inv_hw
    e = _excite(s, w1t_ref, b1_ref, w2_ref, b2_ref)              # (bt, C, 1)
    # Rescale in x's storage dtype (bf16 stays bf16 on v6e/v7x).
    o_ref[...] = (x_raw * e.astype(x_raw.dtype)).astype(o_ref.dtype)


# ---------------------------------------------------------------------------
# Two-phase path, phase 1: per-batch spatial-sum accumulation + excitation.
# ---------------------------------------------------------------------------
def _pool_excite_kernel(x_ref, w1t_ref, b1_ref, w2_ref, b2_ref, e_ref, acc_ref,
                        *, inv_hw, hw_total, hw_tile, mask_tail):
    hw = pl.program_id(1)

    @pl.when(hw == 0)
    def _():
        acc_ref[...] = jnp.zeros_like(acc_ref)

    xv = x_ref[...].astype(jnp.float32)                          # (1, C, hw_tile)
    if mask_tail:
        # Ragged tail handled in-kernel: no HBM-level padding of x.
        rem = hw_total - hw * hw_tile
        lane = jax.lax.broadcasted_iota(jnp.int32, xv.shape, 2)
        xv = jnp.where(lane < rem, xv, 0.0)
    acc_ref[...] += jnp.sum(xv, axis=-1, keepdims=True)          # (1, C, 1)

    @pl.when(hw == pl.num_programs(1) - 1)
    def _():
        s = acc_ref[...] * inv_hw                                # (1, C, 1) mean
        e_ref[...] = _excite(s, w1t_ref, b1_ref, w2_ref, b2_ref)


# ---------------------------------------------------------------------------
# Two-phase path, phase 2: channel rescale over byte-sized (b, C, hw) blocks.
# ---------------------------------------------------------------------------
def _rescale_kernel(x_ref, e_ref, o_ref):
    # x_ref: (bt, C, hw_tile), e_ref: (bt, C, 1) -> lane broadcast only.
    o_ref[...] = (x_ref[...] * e_ref[...]).astype(o_ref.dtype)


def se_block(x, w1, b1, w2, b2, *,
             block_budget_bytes=4 * 1024 * 1024,
             fuse_block_bytes=4 * 1024 * 1024,
             vmem_limit_bytes=48 * 1024 * 1024):
    """SEBlock forward.  x: (B, C, H, W) NCHW.
    w1: (Cr, C), b1: (Cr,)  -- nn.Linear(C, Cr) (out, in) convention
    w2: (C, Cr), b2: (C,)   -- nn.Linear(Cr, C)
    """
    B, C, H, W = x.shape
    Cr = w1.shape[0]
    HW = H * W
    inv_hw = 1.0 / float(HW)

    # NOTE: merging H, W into one lane-dense axis; the reshape is the price of
    # NCHW + small W (lane density is the dominant lever per the TPU docs).
    x_flat = x.reshape(B, C, HW)

    w1_t = w1.T.astype(jnp.float32)                 # (C, Cr)
    w2_f = w2.astype(jnp.float32)                   # (C, Cr) torch layout
    b1_r = b1.reshape(1, Cr).astype(jnp.float32)    # (1, Cr)
    b2_c = b2.reshape(C, 1).astype(jnp.float32)     # (C, 1)

    def _cparams(sem):
        return pltpu.CompilerParams(dimension_semantics=sem,
                                    vmem_limit_bytes=vmem_limit_bytes)

    # Per-batch f32 working set in the fused kernel (x row + MLP temps + gate).
    per_b_f32 = (C * HW + 2 * C * Cr + 4 * C) * 4

    if per_b_f32 <= fuse_block_bytes:
        # ------------------ fused single-pass path ------------------------
        b_tile = max(1, min(B, fuse_block_bytes // per_b_f32))
        if B >= 2:
            b_tile = min(b_tile, -(-B // 2))        # >= 2 blocks for megacore
        nb = pl.cdiv(B, b_tile)
        out_flat = pl.pallas_call(
            functools.partial(_se_fused_kernel, inv_hw=inv_hw),
            out_shape=jax.ShapeDtypeStruct((B, C, HW), x.dtype),
            grid_spec=pltpu.PrefetchScalarGridSpec(
                num_scalar_prefetch=0,
                grid=(nb,),
                in_specs=[
                    pl.BlockSpec((b_tile, C, HW), lambda i: (i, 0, 0)),   # x
                    pl.BlockSpec((C, Cr), lambda i: (0, 0)),              # W1^T
                    pl.BlockSpec((1, Cr), lambda i: (0, 0)),              # b1
                    pl.BlockSpec((C, Cr), lambda i: (0, 0)),              # W2
                    pl.BlockSpec((C, 1), lambda i: (0, 0)),               # b2
                ],
                out_specs=pl.BlockSpec((b_tile, C, HW), lambda i: (i, 0, 0)),
            ),
            compiler_params=_cparams(("parallel",)),
        )(x_flat, w1_t, b1_r, w2_f, b2_c)
        return out_flat.reshape(B, C, H, W)

    # ---------------------- two-phase path ---------------------------------
    # Phase 1: pool + excitation -> gates (B, C, 1) f32.
    hw_tile1 = min(max(128, _round_down(block_budget_bytes // (C * 4), 128)),
                   _round_up(HW, 128))
    n_hw1 = pl.cdiv(HW, hw_tile1)
    mask_tail = (HW % hw_tile1) != 0

    e_col = pl.pallas_call(
        functools.partial(_pool_excite_kernel, inv_hw=inv_hw, hw_total=HW,
                          hw_tile=hw_tile1, mask_tail=mask_tail),
        out_shape=jax.ShapeDtypeStruct((B, C, 1), jnp.float32),
        grid_spec=pltpu.PrefetchScalarGridSpec(
            num_scalar_prefetch=0,
            grid=(B, n_hw1),
            in_specs=[
                pl.BlockSpec((1, C, hw_tile1), lambda b, hw: (b, 0, hw)),  # x
                pl.BlockSpec((C, Cr), lambda b, hw: (0, 0)),               # W1^T
                pl.BlockSpec((1, Cr), lambda b, hw: (0, 0)),               # b1
                pl.BlockSpec((C, Cr), lambda b, hw: (0, 0)),               # W2
                pl.BlockSpec((C, 1), lambda b, hw: (0, 0)),                # b2
            ],
            out_specs=pl.BlockSpec((1, C, 1), lambda b, hw: (b, 0, 0)),
            scratch_shapes=[pltpu.VMEM((1, C, 1), jnp.float32)],
        ),
        compiler_params=_cparams(("parallel", "arbitrary")),
    )(x_flat, w1_t, b1_r, w2_f, b2_c)

    # Rescale multiply runs in x's storage dtype.
    e_col = e_col.astype(x.dtype)

    # Phase 2: HW-tiled rescale; keep as many batch rows per block as the
    # byte budget allows (B-times larger DMAs, B-times fewer grid steps).
    b_tile2 = max(1, min(B, block_budget_bytes // (C * 4 * 128)))
    hw_tile2 = min(max(128, _round_down(block_budget_bytes // (b_tile2 * C * 4),
                                        128)),
                   _round_up(HW, 128))
    grid2 = (pl.cdiv(B, b_tile2), pl.cdiv(HW, hw_tile2))

    out_flat = pl.pallas_call(
        _rescale_kernel,
        out_shape=jax.ShapeDtypeStruct((B, C, HW), x.dtype),
        grid_spec=pltpu.PrefetchScalarGridSpec(
            num_scalar_prefetch=0,
            grid=grid2,
            in_specs=[
                pl.BlockSpec((b_tile2, C, hw_tile2), lambda bi, hw: (bi, 0, hw)),
                pl.BlockSpec((b_tile2, C, 1), lambda bi, hw: (bi, 0, 0)),
            ],
            out_specs=pl.BlockSpec((b_tile2, C, hw_tile2),
                                   lambda bi, hw: (bi, 0, hw)),
        ),
        compiler_params=_cparams(("parallel", "parallel")),
    )(x_flat, e_col)

    return out_flat.reshape(B, C, H, W)


def se_block_ref(x, w1, b1, w2, b2):
    """Pure-JAX reference matching the PyTorch SEBlock forward."""
    s = jnp.mean(x, axis=(2, 3))                                     # (B, C)
    h = jnp.dot(s, w1.T, precision=jax.lax.Precision.HIGHEST) + b1   # (B, Cr)
    h = h * jax.nn.sigmoid(h)                                        # Swish
    e = jax.nn.sigmoid(
        jnp.dot(h, w2.T, precision=jax.lax.Precision.HIGHEST) + b2)  # (B, C)
    return x * e[:, :, None, None]


if __name__ == "__main__":
    # Shapes consistent with SEBlock(channels=32, reduction_ratio=4).
    B, C, H, W = 2, 32, 16, 16
    Cr = C // 4

    key = jax.random.PRNGKey(0)
    kx, k1, k2, k3, k4, kx2 = jax.random.split(key, 6)

    x = jax.random.normal(kx, (B, C, H, W), dtype=jnp.float32)

    bound1 = 1.0 / (C ** 0.5)
    w1 = jax.random.uniform(k1, (Cr, C), jnp.float32, -bound1, bound1)
    b1 = jax.random.uniform(k2, (Cr,), jnp.float32, -bound1, bound1)
    bound2 = 1.0 / (Cr ** 0.5)
    w2 = jax.random.uniform(k3, (C, Cr), jnp.float32, -bound2, bound2)
    b2 = jax.random.uniform(k4, (C,), jnp.float32, -bound2, bound2)

    # Default (fused) path.
    out = jax.block_until_ready(se_block(x, w1, b1, w2, b2))
    ref = se_block_ref(x, w1, b1, w2, b2)
    assert out.shape == (B, C, H, W)
    assert jnp.allclose(out, ref, atol=1e-5, rtol=1e-5)

    # Also exercise the tiled two-phase path (multi-step HW reduction with a
    # ragged 400 % 128 tail and out-of-bounds tail stores) on a small input.
    x2 = jax.random.normal(kx2, (B, C, 20, 20), dtype=jnp.float32)
    out2 = jax.block_until_ready(
        se_block(x2, w1, b1, w2, b2, fuse_block_bytes=0,
                 block_budget_bytes=16 * 1024))
    ref2 = se_block_ref(x2, w1, b1, w2, b2)
    assert out2.shape == x2.shape
    assert jnp.allclose(out2, ref2, atol=1e-5, rtol=1e-5)

    print("KERNEL_OK")
</pallas_src>

<mosaic_0001>
module attributes {stable_mosaic.version = 11 : i64} {
  func.func @_se_fused_kernel(%arg0: i32, %arg1: memref<1x32x256xf32, #tpu.memory_space<vmem>>, %arg2: memref<32x8xf32, #tpu.memory_space<vmem>>, %arg3: memref<1x8xf32, #tpu.memory_space<vmem>>, %arg4: memref<32x8xf32, #tpu.memory_space<vmem>>, %arg5: memref<32x1xf32, #tpu.memory_space<vmem>>, %arg6: memref<1x32x256xf32, #tpu.memory_space<vmem>>) attributes {dimension_semantics = [#tpu.dimension_semantics<parallel>], iteration_bounds = array<i64: 2>, scalar_prefetch = 0 : i64, scratch_operands = 0 : i64, tpu.core_type = #tpu.core_type<tc>, window_params = [{transform_indices = @transform_0, window_bounds = array<i64: 1, 32, 256>}, {pipeline_mode = #tpu.pipeline_mode<synchronous>, transform_indices = @transform_1, window_bounds = array<i64: 32, 8>}, {pipeline_mode = #tpu.pipeline_mode<synchronous>, transform_indices = @transform_2, window_bounds = array<i64: 1, 8>}, {pipeline_mode = #tpu.pipeline_mode<synchronous>, transform_indices = @transform_3, window_bounds = array<i64: 32, 8>}, {pipeline_mode = #tpu.pipeline_mode<synchronous>, transform_indices = @transform_4, window_bounds = array<i64: 32, 1>}, {transform_indices = @transform_5, window_bounds = array<i64: 1, 32, 256>}]} {
    %c0 = arith.constant 0 : index
    %c0_0 = arith.constant 0 : index
    %c0_1 = arith.constant 0 : index
    %0 = vector.load %arg1[%c0, %c0_0, %c0_1] : memref<1x32x256xf32, #tpu.memory_space<vmem>>, vector<1x32x256xf32>
    %cst = arith.constant dense<0.000000e+00> : vector<1x32xf32>
    %1 = vector.multi_reduction <add>, %0, %cst [2] : vector<1x32x256xf32> to vector<1x32xf32>
    %2 = vector.shape_cast %1 : vector<1x32xf32> to vector<1x32x1xf32>
    %cst_2 = arith.constant 3.906250e-03 : f32
    %3 = vector.broadcast %cst_2 : f32 to vector<1x32x1xf32>
    %4 = arith.mulf %2, %3 : vector<1x32x1xf32>
    %c0_3 = arith.constant 0 : index
    %c0_4 = arith.constant 0 : index
    %5 = vector.load %arg2[%c0_3, %c0_4] : memref<32x8xf32, #tpu.memory_space<vmem>>, vector<32x8xf32>
    %c0_5 = arith.constant 0 : index
    %c0_6 = arith.constant 0 : index
    %6 = vector.load %arg4[%c0_5, %c0_6] : memref<32x8xf32, #tpu.memory_space<vmem>>, vector<32x8xf32>
    %c0_7 = arith.constant 0 : index
    %c0_8 = arith.constant 0 : index
    %7 = vector.load %arg3[%c0_7, %c0_8] : memref<1x8xf32, #tpu.memory_space<vmem>>, vector<1x8xf32>
    %c0_9 = arith.constant 0 : index
    %c0_10 = arith.constant 0 : index
    %8 = vector.load %arg5[%c0_9, %c0_10] : memref<32x1xf32, #tpu.memory_space<vmem>>, vector<32x1xf32>
    %9 = vector.shape_cast %5 : vector<32x8xf32> to vector<1x32x8xf32>
    %10 = vector.broadcast %4 : vector<1x32x1xf32> to vector<1x32x8xf32>
    %11 = arith.mulf %10, %9 : vector<1x32x8xf32>
    %cst_11 = arith.constant dense<0.000000e+00> : vector<1x8xf32>
    %12 = vector.multi_reduction <add>, %11, %cst_11 [1] : vector<1x32x8xf32> to vector<1x8xf32>
    %13 = vector.shape_cast %12 : vector<1x8xf32> to vector<1x1x8xf32>
    %14 = vector.shape_cast %7 : vector<1x8xf32> to vector<1x1x8xf32>
    %15 = arith.addf %13, %14 : vector<1x1x8xf32>
    %16 = arith.negf %15 : vector<1x1x8xf32>
    %17 = math.exp %16 : vector<1x1x8xf32>
    %cst_12 = arith.constant 1.000000e+00 : f32
    %18 = vector.broadcast %cst_12 : f32 to vector<1x1x8xf32>
    %19 = arith.addf %18, %17 : vector<1x1x8xf32>
    %20 = arith.divf %18, %19 : vector<1x1x8xf32>
    %21 = arith.mulf %15, %20 : vector<1x1x8xf32>
    %22 = vector.shape_cast %6 : vector<32x8xf32> to vector<1x32x8xf32>
    %23 = vector.broadcast %21 : vector<1x1x8xf32> to vector<1x32x8xf32>
    %24 = arith.mulf %22, %23 : vector<1x32x8xf32>
    %cst_13 = arith.constant dense<0.000000e+00> : vector<1x32xf32>
    %25 = vector.multi_reduction <add>, %24, %cst_13 [2] : vector<1x32x8xf32> to vector<1x32xf32>
    %26 = vector.shape_cast %25 : vector<1x32xf32> to vector<1x32x1xf32>
    %27 = vector.shape_cast %8 : vector<32x1xf32> to vector<1x32x1xf32>
    %28 = arith.addf %26, %27 : vector<1x32x1xf32>
    %29 = arith.negf %28 : vector<1x32x1xf32>
    %30 = math.exp %29 : vector<1x32x1xf32>
    %cst_14 = arith.constant 1.000000e+00 : f32
    %31 = vector.broadcast %cst_14 : f32 to vector<1x32x1xf32>
    %32 = arith.addf %31, %30 : vector<1x32x1xf32>
    %33 = arith.divf %31, %32 : vector<1x32x1xf32>
    %34 = vector.broadcast %33 : vector<1x32x1xf32> to vector<1x32x256xf32>
    %35 = arith.mulf %0, %34 : vector<1x32x256xf32>
    %c0_15 = arith.constant 0 : index
    %c0_16 = arith.constant 0 : index
    %c0_17 = arith.constant 0 : index
    %36 = vector.load %arg6[%c0_15, %c0_16, %c0_17] : memref<1x32x256xf32, #tpu.memory_space<vmem>>, vector<1x32x256xf32>
    tpu.vector_store %arg6[%c0_15, %c0_16, %c0_17], %35 {strides = array<i32>} : memref<1x32x256xf32, #tpu.memory_space<vmem>>, vector<1x32x256xf32>,
    return
  }
  func.func @transform_0(%arg0: i32) -> (i32, i32, i32) {
    %c0_i32 = arith.constant 0 : i32
    %c0_i32_0 = arith.constant 0 : i32
    %c0_i32_1 = arith.constant 0 : i32
    return %arg0, %c0_i32, %c0_i32_0 : i32, i32, i32
  }
  func.func @transform_1(%arg0: i32) -> (i32, i32) {
    %c0_i32 = arith.constant 0 : i32
    %c0_i32_0 = arith.constant 0 : i32
    %c0_i32_1 = arith.constant 0 : i32
    return %c0_i32, %c0_i32_0 : i32, i32
  }
  func.func @transform_2(%arg0: i32) -> (i32, i32) {
    %c0_i32 = arith.constant 0 : i32
    %c0_i32_0 = arith.constant 0 : i32
    %c0_i32_1 = arith.constant 0 : i32
    return %c0_i32, %c0_i32_0 : i32, i32
  }
  func.func @transform_3(%arg0: i32) -> (i32, i32) {
    %c0_i32 = arith.constant 0 : i32
    %c0_i32_0 = arith.constant 0 : i32
    %c0_i32_1 = arith.constant 0 : i32
    return %c0_i32, %c0_i32_0 : i32, i32
  }
  func.func @transform_4(%arg0: i32) -> (i32, i32) {
    %c0_i32 = arith.constant 0 : i32
    %c0_i32_0 = arith.constant 0 : i32
    %c0_i32_1 = arith.constant 0 : i32
    return %c0_i32, %c0_i32_0 : i32, i32
  }
  func.func @transform_5(%arg0: i32) -> (i32, i32, i32) {
    %c0_i32 = arith.constant 0 : i32
    %c0_i32_0 = arith.constant 0 : i32
    %c0_i32_1 = arith.constant 0 : i32
    return %arg0, %c0_i32, %c0_i32_0 : i32, i32, i32
  }
}

</mosaic_0001>

<bundles_post_ra>
// kernel: tpu_custom_call.1
= control target key start
LH: loop header
LB: loop body
LE: loop exit
PB: predicated region body
PF: predicated region fallthrough
CT: control target
= control target key end

     0   :  { %10 = vsyncpa [#allocation3], 0  ;;  %s981_s0 = inlined_call_operand.hbm [shape: f32[2,32,256], index: 0, kind: input, shape index: {}]   ;;  %s982_s1 = inlined_call_operand.vmem [shape: f32[32,8], index: 1, kind: input, shape index: {}]   ;;  %s983_s2 = inlined_call_operand.vmem [shape: f32[1,8], index: 2, kind: input, shape index: {}]   ;;  %s984_s3 = inlined_call_operand.vmem [shape: f32[32,8], index: 3, kind: input, shape index: {}]   ;;  %s985_s4 = inlined_call_operand.vmem [shape: f32[32,1], index: 4, kind: input, shape index: {}]   ;;  %s986_s5 = inlined_call_operand.hbm [shape: f32[2,32,256], index: 5, kind: output, shape index: {}]  }
   0x1   :  { %12 = vsyncpa [#allocation3 + $0x1], 0 }
   0x2   :  { %13 = vsyncpa [#allocation4], 0 }
   0x3   :  { %15 = vsyncpa [#allocation4 + $0x1], 0  ;;  %s771_s18 = smov 0   ;;  %s773_s19 = smov 0  }
   0x4   :  { %s775_s20 = smov 0   ;;  %s777_s21 = smov 0  }
   0x5 LB: > { %s792_s22 = sadd.s32 4294967295, %s734_s21   ;;  %s543_s23 = sadd.s32 4294967294, %s734_s21   ;;  %s734_s21 = sphi %s777_s21, %s996_s21   ;;  %s730_s20 = sphi %s775_s20, %s995_s20   ;;  %s726_s19 = sphi %s773_s19, %s994_s19   ;;  %s722_s18 = sphi %s771_s18, %s993_s18  }
   0x6   : > { %s796_s24 = sadd.s32 1, %s734_s21   ;;  %s28_s25 = sadd.s32 1, %s730_s20 }
   0x7   : > { %s25_s26 = ssub.s32 %s734_s21, %s796_s24  ;;  %p35_p0 = scmp.ne.s32.totalorder %s730_s20, %s726_s19 }
   0x8   : > { %p26_p1 = scmp.eq.s32.totalorder %s25_s26, 0  ;;  %p36_p2 = scmp.eq.s32.totalorder %s734_s21, 0 }
   0x9   : > { %p41_p3 = scmp.ne.s32.totalorder %s726_s19, %s722_s18  ;;  %p42_p4 = scmp.eq.s32.totalorder %s792_s22, 0 }
   0xa   : > { %s808_s27 = scalar_select %p26_p1, %s730_s20, %s28_s25  }
   0xb   : > { %p810_p5 = por %p36_p2, %p35_p0  ;;  %p814_p6 = por %p42_p4, %p41_p3 }
   0xc   : > { %p149_p7 = scmp.eq.s32.totalorder %s792_s22, 1  ;;  %p155_p8 = scmp.eq.s32.totalorder %s543_s23, 1 }
   0xd   : > { %p576_p10 = scmp.lt.s32.totalorder %s734_s21, 2  ;;  %s187_s7 = sand.u32 1, %s730_s20  }
   0xe   : > { %p821_p11 = por %p149_p7, %p35_p0  ;;  %p825_p12 = por %p155_p8, %p41_p3 }
   0xf   : > { %s562_s8 = sshll.u32 %s734_s21, 6  ;;  %s546_s9 = sshll.u32 %s187_s7, 6 }
  0x10   : > { %s196_s12 = scalar_lea.hbm %s981_s0, %s562_s8  ;;  %s191_s14 = scalar_lea.vmem [#allocation2], %s546_s9 }
  0x11   : > { %s197_s13 = sshll.u32 %s196_s12, 4  ;;  %s199_s15 = sshll.u32 %s191_s14, 4  ;;  %s198_s13 = int_to_ptr.hbm [resolvable:$true] %s197_s13  ;;  %s200_s15 = int_to_ptr.vmem [resolvable:$true] %s199_s15 }
  0x12   : > { %p836_p13 = pnand %p576_p10, %p810_p5  ;;  %p549_p0 = scmp.ge.s32.totalorder %s734_s21, 1 }
  0x13   : > { %p207_p1 = scmp.lt.s32.totalorder %s734_s21, 3  ;;  %s188_s17 = scalar_lea.sflag [#allocation3], %s187_s7 }
  0x14   : > { %s638_s23 = sshra.s32 %s198_s13, 4  ;;  %p642_p3 = pneg %p836_p13  ;;  %s639_s23 = int_to_ptr.hbm [resolvable:$true] %s638_s23 }
  0x15   : > { %s640_s25 = scalar_lea.hbm %s639_s23, 64  ;;  %s645_s28 = scalar_lea.hbm %s981_s0, 128 }
  0x16   : > { %p641_p2 = scmp.ne.s32.totalorder %s639_s23, %s640_s25  ;;  %p646_p5 = scmp.lt.s32.totalorder %s639_s23, %s981_s0 }
  0x17   : > { %p647_p8 = scmp.lt.s32.totalorder %s645_s28, %s640_s25 }
  0x18   : > { %p643_p4 = pnand %p642_p3, %p641_p2 }
  0x19   : > { %p648_p10 = por %p647_p8, %p646_p5 }
  0x1a   : > { %p644_p7 = pneg %p643_p4 }
  0x1c   : > { %p649_p9 = pnand %p648_p10, %p644_p7 }
  0x1e   : > { %652 = shalt.err (!%p649_p9)
}
  0x1f   : > { %s736_s7 = smov 256   ;;  %s737_s11 = smov 16  }
  0x20   : > { %571 = dma.hbm_to_vmem [thread:$0]  (!%p836_p13), %s198_s13, 1024, %s200_s15, %s188_s17, %s736_s7, %s736_s7, %s737_s11  }
  0x21   : > { %p208_p2 = pnand %p549_p0, %p207_p1 }
  0x22   : > { %s857_s12 = sand.u32 (!%p208_p2), 1, %s726_s19  }
  0x23   : > { %211 = sbr.rel (%p208_p2) target bundleno = 508 (0x1fc), region = 40  ;;  %s550_s14 = sshll.u32 (!%p208_p2), %s857_s12, 6 }
  0x24   : > { %s214_s23 = scalar_lea.sflag (!%p208_p2), [#allocation3], %s857_s12  ;;  %s217_s25 = scalar_lea.vmem (!%p208_p2), [#allocation2], %s550_s14 }
  0x28   : > { %713 = dma.done.wait (%p814_p6), %s214_s23, 1024  }
  0x29   : > { %715 = vsyncadd (%p814_p6), %s214_s23, 4294966272  ;;  %v867_v0 = vld [vmem:[%s217_s25] sm:$0xff]  ;;  %v869_v1 = vld [vmem:[%s217_s25 + $0x8] sm:$0xff]  ;;  %vm286_vm0 = vcmask 64512   ;;  %s244_s23 = scalar_lea.vmem [#allocation5], %s550_s14  ;;  %s455_s17 = scalar_lea.sflag [#allocation4], %s857_s12 }
  0x2a   : > { %v871_v2 = vld [vmem:[%s217_s25 + $0x20] sm:$0xff]  ;;  %v253_v3 = vadd.f32 %v869_v1, %v867_v0  ;;  %v875_v4 = vld [vmem:[%s217_s25 + $0x28] sm:$0xff]  ;;  %v879_v6 = vld [vmem:[%s217_s25 + $0x10] sm:$0xff]  ;;  %s467_s15 = sshll.u32 %s244_s23, 4  ;;  %s688_s9 = scalar_lea.hbm %s986_s5, 128  ;;  %s468_s15 = int_to_ptr.vmem [resolvable:$true] %s467_s15 }
  0x2b   : > { %v259_v5 = vadd.f32 %v875_v4, %v871_v2  ;;  %v881_v7 = vld [vmem:[%s217_s25 + $0x18] sm:$0xff]  ;;  %v883_v8 = vld [vmem:[%s217_s25 + $0x30] sm:$0xff]  ;;  %v269_v15 = vld [vmem:[%s982_s1] sm:$0xff] }
  0x2c   : > { %254 = vadd.xlane.f32.xlu0 %v253_v3  ;;  %v885_v9 = vld [vmem:[%s217_s25 + $0x38] sm:$0xff]  ;;  %v256_v10 = vadd.f32 %v881_v7, %v879_v6  ;;  %v271_v17 = vld [vmem:[%s982_s1 + $0x10] sm:$0xff]  ;;  %v270_v18 = vld [vmem:[%s982_s1 + $0x8] sm:$0xff]  ;;  %s563_s25 = sshll.u32 %s792_s22, 6 }
  0x2d   : > { %260 = vadd.xlane.f32.xlu1 %v259_v5  ;;  %v262_v11 = vadd.f32 %v885_v9, %v883_v8  ;;  %v272_v22 = vld [vmem:[%s982_s1 + $0x18] sm:$0xff]  ;;  %v277_v40 = vld [vmem:[%s983_s2] sm:$0x1]  ;;  %v275_v58 = vld [vmem:[%s984_s3 + $0x10] sm:$0xff]  ;;  %s466_s13 = scalar_lea.hbm %s986_s5, %s563_s25 }
  0x2e   : > { %v276_v57 = vld [vmem:[%s984_s3 + $0x18] sm:$0xff]  ;;  %v273_v59 = vld [vmem:[%s984_s3] sm:$0xff]  ;;  %s469_s16 = sshll.u32 %s466_s13, 4  ;;  %s470_s16 = int_to_ptr.hbm [resolvable:$true] %s469_s16 }
  0x2f   : > { %s682_s26 = sshra.s32 %s470_s16, 4  ;;  %s683_s26 = int_to_ptr.hbm [resolvable:$true] %s682_s26 }
  0x30   : > { %s684_s22 = scalar_lea.hbm %s683_s26, 64  ;;  %p689_p0 = scmp.lt.s32.totalorder %s683_s26, %s986_s5 }
  0x31   : > { %p685_p6 = scmp.ne.s32.totalorder %s683_s26, %s684_s22  ;;  %p690_p1 = scmp.lt.s32.totalorder %s688_s9, %s684_s22 }
  0x33   : > { %p686_p9 = pnand %p685_p6, %p821_p11  ;;  %p691_p3 = por %p690_p1, %p689_p0 }
  0x34   : > { %257 = vadd.xlane.f32.xlu0 %v256_v10 }
  0x35   : > { %263 = vadd.xlane.f32.xlu1 %v262_v11  ;;  %v274_v11 = vld [vmem:[%s984_s3 + $0x8] sm:$0xff]  ;;  %p687_p13 = pneg %p686_p9 }
  0x37   : > { %p692_p4 = pnand %p691_p3, %p687_p13 }
  0x9f   : > { %v255_v12 = vpop.xlane.xlu0 %254 }
  0xa0   : > { %v261_v13 = vpop.xlane.xlu1 %260  ;;  %v265_v14 = vmul.f32 0.00390625, %v255_v12 }
  0xa1   : > { %v267_v16 = vmul.f32 0.00390625, %v261_v13 }
  0xa2   : > { %v282_v20 = vmul.f32 %v269_v15, %v265_v14  ;;  %v738_v14 = vmov 0   ;;  %v281_v15 = vld [vmem:[%s985_s4 + $0x18] sm:$0xff] }
  0xa3   : > { %v284_v25 = vmul.f32 %v271_v17, %v267_v16  ;;  %617 = vset.pattern.permute.xlu1 %v738_v14  ;;  %615 = vset.pattern.permute.xlu2 %v738_v14  ;;  %v280_v16 = vld [vmem:[%s985_s4 + $0x10] sm:$0xff]  ;;  %v278_v17 = vld [vmem:[%s985_s4] sm:$0xff] }
  0xa4   : > { %v287_v28 = vsel %vm286_vm0, %v282_v20, 0.0  ;;  %616 = vset.pattern.permute.xlu0 %v738_v14 }
  0xa5   : > { %v290_v31 = vsel %vm286_vm0, %v284_v25, 0.0 }
  0xa7   : > { %v258_v19 = vpop.xlane.xlu0 %257 }
  0xa8   : > { %v266_v21 = vmul.f32 0.00390625, %v258_v19  ;;  %v264_v23 = vpop.xlane.xlu1 %263 }
  0xa9   : > { %v268_v24 = vmul.f32 0.00390625, %v264_v23 }
  0xaa   : > { %v283_v26 = vmul.f32 %v270_v18, %v266_v21 }
  0xab   : > { %v285_v27 = vmul.f32 %v272_v22, %v268_v24 }
  0xac   : > { %v288_v29 = vsel %vm286_vm0, %v283_v26, 0.0 }
  0xad   : > { %v289_v30 = vadd.f32 %v288_v29, %v287_v28  ;;  %v292_v32 = vsel %vm286_vm0, %v285_v27, 0.0  ;;  %v279_v27 = vld [vmem:[%s985_s4 + $0x8] sm:$0xff] }
  0xaf   : > { %v291_v33 = vadd.f32 %v290_v31, %v289_v30 }
  0xb1   : > { %v293_v34 = vadd.f32 %v292_v32, %v291_v33 }
  0xb3   : > { %v294_v35 = vrot.slane %v293_v34, 4 }
  0xb5   : > { %v295_v36 = vadd.f32 %v294_v35, %v293_v34 }
  0xb7   : > { %v296_v37 = vrot.slane %v295_v36, 2 }
  0xb9   : > { %v297_v38 = vadd.f32 %v296_v37, %v295_v36 }
  0xbb   : > { %v298_v39 = vrot.slane %v297_v38, 1 }
  0xbd   : > { %v299_v41 = vadd.f32 %v298_v39, %v297_v38 }
  0xbf   : > { %v300_v42 = vadd.f32 %v299_v41, %v277_v40 }
  0xc1   : > { %v552_v43 = vmul.f32 -1.442695, %v300_v42 }
  0xc3   : > { %618 = vpow2.f32 %v552_v43 }
  0xc9   : > { %v619_v44 = vpop.eup %618 }
  0xca   : > { %v304_v45 = vadd.f32 1.0, %v619_v44 }
  0xcc   : > { %620 = vrcp.f32 %v304_v45  ;;  %v316_v49 = vand.u32 2147483648, %v304_v45  ;;  %v314_v51 = vand.u32 2147483647, %v304_v45  ;;  %vm310_vm2 = vweird.f32 %v304_v45 }
  0xce   : > { %v317_v53 = vor.u32 1.1754944e-38, %v316_v49  ;;  %vm315_vm4 = vcmp.eq.f32.partialorder %v314_v51, 8.507059e+37 }
  0xd2   : > { %v621_v46 = vpop.eup %620 }
  0xd3   : > { %v306_v47 = vmul.f32 %v621_v46, %v304_v45  ;;  %vm311_vm1 = vweird.f32 %v621_v46 }
  0xd4   : > { %vm312_vm3 = vmor %vm310_vm2, %vm311_vm1 }
  0xd5   : > { %v307_v48 = vsub.f32 1.0, %v306_v47 }
  0xd7   : > { %v308_v50 = vmul.f32 %v621_v46, %v307_v48 }
  0xd9   : > { %v309_v52 = vadd.f32 %v621_v46, %v308_v50 }
  0xdb   : > { %v313_v54 = vsel %vm312_vm3, %v621_v46, %v309_v52 }
  0xdc   : > { %v318_v55 = vsel %vm315_vm4, %v317_v53, %v313_v54 }
  0xdd   : > { %v320_v56 = vmul.f32 %v318_v55, %v300_v42 }
  0xdf   : > { %v321_v60 = vperm.slane %v320_v56, 0 }
  0xe1   : > { %v325_v61 = vmul.f32 %v321_v60, %v276_v57  ;;  %v324_v62 = vmul.f32 %v321_v60, %v275_v58  ;;  %v322_v63 = vmul.f32 %v321_v60, %v273_v59  ;;  %v323_v12 = vmul.f32 %v321_v60, %v274_v11 }
  0xe3   : > { %v335_v3 = vsel %vm286_vm0, %v325_v61, 0.0  ;;  %v332_v5 = vsel %vm286_vm0, %v324_v62, 0.0  ;;  %v326_v10 = vsel %vm286_vm0, %v322_v63, 0.0  ;;  %v329_v13 = vsel %vm286_vm0, %v323_v12, 0.0 }
  0xe4   : > { %336 = vadd.xlane.f32.xlu1 %v335_v3  ;;  %333 = vadd.xlane.f32.xlu0 %v332_v5 }
  0xe5   : > { %327 = vadd.xlane.f32.xlu2 %v326_v10 }
  0xed   : > { %330 = vadd.xlane.f32.xlu2 %v329_v13 }
 0x157   : > { %v337_v18 = vpop.xlane.xlu1 %336  ;;  %v334_v19 = vpop.xlane.xlu0 %333 }
 0x158   : > { %v341_v20 = vadd.f32 %v337_v18, %v281_v15  ;;  %v340_v21 = vadd.f32 %v334_v19, %v280_v16  ;;  %v328_v22 = vpop.xlane.xlu2 %327 }
 0x159   : > { %v338_v23 = vadd.f32 %v328_v22, %v278_v17 }
 0x15a   : > { %v556_v24 = vmul.f32 -1.442695, %v341_v20  ;;  %v555_v25 = vmul.f32 -1.442695, %v340_v21 }
 0x15b   : > { %v553_v26 = vmul.f32 -1.442695, %v338_v23 }
 0x15c   : > { %622 = vpow2.f32 %v556_v24 }
 0x15d   : > { %624 = vpow2.f32 %v555_v25 }
 0x15e   : > { %626 = vpow2.f32 %v553_v26 }
 0x160   : > { %v331_v28 = vpop.xlane.xlu2 %330 }
 0x161   : > { %v339_v29 = vadd.f32 %v331_v28, %v279_v27 }
 0x162   : > { %v623_v30 = vpop.eup %622 }
 0x163   : > { %v625_v31 = vpop.eup %624  ;;  %v357_v32 = vadd.f32 1.0, %v623_v30  ;;  %v554_v35 = vmul.f32 -1.442695, %v339_v29 }
 0x164   : > { %v627_v33 = vpop.eup %626  ;;  %v356_v34 = vadd.f32 1.0, %v625_v31 }
 0x165   : > { %628 = vrcp.f32 %v357_v32  ;;  %v354_v36 = vadd.f32 1.0, %v627_v33  ;;  %v414_v10 = vand.u32 2147483648, %v357_v32  ;;  %vm408_vm14 = vweird.f32 %v357_v32 }
 0x166   : > { %630 = vrcp.f32 %v356_v34  ;;  %v397_v46 = vand.u32 2147483647, %v356_v34  ;;  %v399_v47 = vand.u32 2147483648, %v356_v34  ;;  %vm393_vm7 = vweird.f32 %v356_v34 }
 0x167   : > { %632 = vrcp.f32 %v354_v36  ;;  %v369_v51 = vand.u32 2147483648, %v354_v36  ;;  %v367_v53 = vand.u32 2147483647, %v354_v36  ;;  %vm363_vm9 = vweird.f32 %v354_v36 }
 0x168   : > { %634 = vpow2.f32 %v554_v35  ;;  %v400_v55 = vor.u32 1.1754944e-38, %v399_v47  ;;  %vm398_vm10 = vcmp.eq.f32.partialorder %v397_v46, 8.507059e+37  ;;  %v412_v11 = vand.u32 2147483647, %v357_v32 }
 0x169   : > { %v370_v59 = vor.u32 1.1754944e-38, %v369_v51  ;;  %vm368_vm12 = vcmp.eq.f32.partialorder %v367_v53, 8.507059e+37  ;;  %v415_v17 = vor.u32 1.1754944e-38, %v414_v10 }
 0x16a   : > { %vm413_vm1 = vcmp.eq.f32.partialorder %v412_v11, 8.507059e+37 }
 0x16b   : > { %v629_v37 = vpop.eup %628 }
 0x16c   : > { %v631_v38 = vpop.eup %630  ;;  %v404_v39 = vmul.f32 %v629_v37, %v357_v32  ;;  %vm409_vm13 = vweird.f32 %v629_v37 }
 0x16d   : > { %v633_v40 = vpop.eup %632  ;;  %v389_v41 = vmul.f32 %v631_v38, %v356_v34  ;;  %vm394_vm5 = vweird.f32 %v631_v38  ;;  %vm410_vm15 = vmor %vm408_vm14, %vm409_vm13 }
 0x16e   : > { %v635_v42 = vpop.eup %634  ;;  %v359_v43 = vmul.f32 %v633_v40, %v354_v36  ;;  %v405_v49 = vsub.f32 1.0, %v404_v39  ;;  %vm364_vm6 = vweird.f32 %v633_v40  ;;  %vm395_vm8 = vmor %vm393_vm7, %vm394_vm5 }
 0x16f   : > { %v355_v44 = vadd.f32 1.0, %v635_v42  ;;  %v390_v45 = vsub.f32 1.0, %v389_v41  ;;  %vm365_vm11 = vmor %vm363_vm9, %vm364_vm6 }
 0x170   : > { %v360_v48 = vsub.f32 1.0, %v359_v43  ;;  %v406_v57 = vmul.f32 %v629_v37, %v405_v49 }
 0x171   : > { %636 = vrcp.f32 %v355_v44  ;;  %v391_v50 = vmul.f32 %v631_v38, %v390_v45  ;;  %v384_v13 = vand.u32 2147483648, %v355_v44  ;;  %v382_v16 = vand.u32 2147483647, %v355_v44 }
 0x172   : > { %v361_v52 = vmul.f32 %v633_v40, %v360_v48  ;;  %v407_v3 = vadd.f32 %v629_v37, %v406_v57  ;;  %vm378_vm2 = vweird.f32 %v355_v44 }
 0x173   : > { %v392_v54 = vadd.f32 %v631_v38, %v391_v50  ;;  %v385_v20 = vor.u32 1.1754944e-38, %v384_v13  ;;  %vm383_vm4 = vcmp.eq.f32.partialorder %v382_v16, 8.507059e+37 }
 0x174   : > { %v362_v56 = vadd.f32 %v633_v40, %v361_v52  ;;  %v411_v14 = vsel %vm410_vm15, %v629_v37, %v407_v3 }
 0x175   : > { %v396_v58 = vsel %vm395_vm8, %v631_v38, %v392_v54  ;;  %v416_v19 = vsel %vm413_vm1, %v415_v17, %v411_v14 }
 0x176   : > { %v401_v60 = vsel %vm398_vm10, %v400_v55, %v396_v58  ;;  %v366_v61 = vsel %vm365_vm11, %v633_v40, %v362_v56 }
 0x177   : > { %v637_v62 = vpop.eup %636  ;;  %430 = vperm.xlu1 %617, %v401_v60   ;;  %v371_v63 = vsel %vm368_vm12, %v370_v59, %v366_v61 }
 0x178   : > { %420 = vperm.xlu2 %615, %v371_v63   ;;  %v374_v5 = vmul.f32 %v637_v62, %v355_v44  ;;  %vm379_vm0 = vweird.f32 %v637_v62 }
 0x179   : > { %vm380_vm3 = vmor %vm378_vm2, %vm379_vm0 }
 0x17a   : > { %v375_v12 = vsub.f32 1.0, %v374_v5 }
 0x17c   : > { %v376_v15 = vmul.f32 %v637_v62, %v375_v12 }
 0x17e   : > { %v377_v18 = vadd.f32 %v637_v62, %v376_v15 }
 0x180   : > { %435 = vperm.xlu2 %615, %v416_v19   ;;  %v381_v21 = vsel %vm380_vm3, %v637_v62, %v377_v18 }
 0x181   : > { %v386_v22 = vsel %vm383_vm4, %v385_v20, %v381_v21 }
 0x182   : > { %425 = vperm.xlu0 %616, %v386_v22  }
 0x1d2   : > { %v421_v23 = vpop.permute.xlu2 %420 }
 0x1d3   : > { %v438_v24 = vmul.f32 %v421_v23, %v867_v0  ;;  %v439_v25 = vmul.f32 %v421_v23, %v869_v1 }
 0x1d5   : > { %446 = vst [vmem:[%s244_s23] sm:$0xff] %v438_v24 }
 0x1d6   : > { %447 = vst [vmem:[%s244_s23 + $0x8] sm:$0xff] %v439_v25 }
 0x1da   : > { %v436_v26 = vpop.permute.xlu2 %435 }
 0x1db   : > { %v444_v27 = vmul.f32 %v436_v26, %v883_v8  ;;  %v445_v28 = vmul.f32 %v436_v26, %v885_v9 }
 0x1dd   : > { %452 = vst [vmem:[%s244_s23 + $0x30] sm:$0xff] %v444_v27 }
 0x1de   : > { %453 = vst [vmem:[%s244_s23 + $0x38] sm:$0xff] %v445_v28 }
 0x1e9   : > { %v431_v29 = vpop.permute.xlu1 %430 }
 0x1ea   : > { %v442_v30 = vmul.f32 %v431_v29, %v871_v2  ;;  %v443_v31 = vmul.f32 %v431_v29, %v875_v4 }
 0x1ec   : > { %450 = vst [vmem:[%s244_s23 + $0x20] sm:$0xff] %v442_v30 }
 0x1ed   : > { %451 = vst [vmem:[%s244_s23 + $0x28] sm:$0xff] %v443_v31 }
 0x1f4   : > { %v426_v0 = vpop.permute.xlu0 %425 }
 0x1f5   : > { %v440_v1 = vmul.f32 %v426_v0, %v879_v6  ;;  %v441_v8 = vmul.f32 %v426_v0, %v881_v7 }
 0x1f7   : > { %448 = vst [vmem:[%s244_s23 + $0x10] sm:$0xff] %v440_v1 }
 0x1f8   : > { %449 = vst [vmem:[%s244_s23 + $0x18] sm:$0xff] %v441_v8 }
 0x1f9   : > { %695 = shalt.err (!%p692_p4)
}
 0x1fa   : > { %s739_s12 = smov 256   ;;  %s740_s11 = smov 16  }
 0x1fb   : > { %566 = dma.vmem_to_hbm [thread:$0]  (%p821_p11), %s468_s15, 1024, %s470_s16, %s455_s17, %s739_s12, %s739_s12, %s740_s11  }
 0x1fc PF: > { %s484_s23 = sand.u32 1, %s722_s18   ;;  %p992_p7 = scmp.ge.s32.totalorder %s734_s21, 2 }
 0x1fd   : > { %s485_s25 = scalar_lea.sflag [#allocation4], %s484_s23 }
 0x1fe   : > { %p573_p5 = pnand %p992_p7, %p825_p12 }
 0x200   : > { %p574_p8 = pneg %p573_p5 }
 0x202   : > { %717 = dma.done.wait (%p574_p8), %s485_s25, 1024  }
 0x203   : > { %719 = vsyncadd (%p574_p8), %s485_s25, 4294966272  ;;  %p18_p10 = scmp.ge.s32.totalorder %s796_s24, 4   ;;  %s993_s18 = smov %s726_s19 }
 0x204   : > { %s994_s19 = smov %s730_s20  ;;  %s995_s20 = smov %s808_s27 }
 0x205   : > { %s996_s21 = smov %s796_s24  ;;  %20 = sbr.rel (!%p18_p10) target bundleno = 5 (0x5), region = 85 }
 0x20a   :  { %491 = vsyncpa [#allocation3], 1 }
 0x20b   :  { %493 = vsyncpa [#allocation3 + $0x1], 1 }
 0x20c   :  { %494 = vsyncpa [#allocation4], 1 }
 0x20d   :  { %496 = vsyncpa [#allocation4 + $0x1], 1 }

</bundles_post_ra>
